<compile_context>
chip_gen: v5e
topology: v5e:2x2
jax: 0.10.0
libtpu: 0.0.40
codegen_flags: <defaults>
</compile_context>

<pallas_src>
import jax
import jax.numpy as jnp
from jax import lax
from jax.experimental import pallas as pl
from jax.experimental.pallas import tpu as pltpu

EPS = 1e-5


def _make_block_kernel(cnt1, cnt2, m2, l2):
    """Builds the fused conv->BN->ReLU->conv->BN->ReLU kernel (shapes baked in)."""

    def block_kernel(x_ref, w1_ref, w2_ref, gb_ref, f_ref, ft_ref, mask_ref, out_ref):
        # ---------------- conv1: one MXU matmul, K = 3*W*Cin ----------------
        acc1 = jnp.dot(x_ref[...], w1_ref[...],
                       preferred_element_type=jnp.float32)       # (M1, L1)

        f1 = f_ref[...]        # (L1, Cout) 0/1 fold matrix
        ft1 = ft_ref[...]      # (Cout, L1) its transpose (expand matrix)

        # ------------- BN1 (training stats) + ReLU, folded FMA --------------
        g1, be1 = gb_ref[0:1, :], gb_ref[1:2, :]
        s1 = jnp.sum(acc1, axis=0, keepdims=True)                # (1, L1)
        s2 = jnp.sum(acc1 * acc1, axis=0, keepdims=True)         # (1, L1)
        s1c = jnp.dot(s1, f1, preferred_element_type=jnp.float32)   # (1, Cout)
        s2c = jnp.dot(s2, f1, preferred_element_type=jnp.float32)   # (1, Cout)
        mean = s1c / cnt1
        var = jnp.maximum(s2c / cnt1 - mean * mean, 0.0)         # biased variance
        scale_c = g1 * lax.rsqrt(var + EPS)
        shift_c = be1 - mean * scale_c
        scale = jnp.dot(scale_c, ft1, preferred_element_type=jnp.float32)  # (1, L1)
        shift = jnp.dot(shift_c, ft1, preferred_element_type=jnp.float32)  # (1, L1)
        y1 = jnp.maximum(acc1 * scale + shift, 0.0)              # (M1, L1) lane-dense

        # ------- conv2: 3 tap matmuls on sublane-offset row windows ---------
        acc2 = jnp.dot(y1[0:m2, :], w2_ref[0],
                       preferred_element_type=jnp.float32)       # (M2, L2)
        acc2 = acc2 + jnp.dot(y1[1:1 + m2, :], w2_ref[1],
                              preferred_element_type=jnp.float32)
        acc2 = acc2 + jnp.dot(y1[2:2 + m2, :], w2_ref[2],
                              preferred_element_type=jnp.float32)

        # --------- BN2 (masked training stats) + ReLU, folded FMA -----------
        f2 = f_ref[0:l2, :]       # (L2, Cout)
        ft2 = ft_ref[:, 0:l2]     # (Cout, L2)
        mask = mask_ref[...]      # (M2, 1): 1.0 on in-image rows, 0.0 on garbage rows
        g2, be2 = gb_ref[2:3, :], gb_ref[3:4, :]
        am = acc2 * mask
        s1 = jnp.sum(am, axis=0, keepdims=True)                  # (1, L2)
        s2 = jnp.sum(acc2 * am, axis=0, keepdims=True)           # (1, L2)
        s1c = jnp.dot(s1, f2, preferred_element_type=jnp.float32)
        s2c = jnp.dot(s2, f2, preferred_element_type=jnp.float32)
        mean = s1c / cnt2
        var = jnp.maximum(s2c / cnt2 - mean * mean, 0.0)
        scale_c = g2 * lax.rsqrt(var + EPS)
        shift_c = be2 - mean * scale_c
        scale = jnp.dot(scale_c, ft2, preferred_element_type=jnp.float32)
        shift = jnp.dot(shift_c, ft2, preferred_element_type=jnp.float32)
        out_ref[...] = jnp.maximum(acc2 * scale + shift, 0.0)    # (M2, L2)

    return block_kernel


def _banded_weight(w_oihw, ow):
    """PyTorch OIHW conv weight -> (3, Win*Cin, OW*Cout) banded im2col slabs.

    wb[kh, (j+kw)*Cin + c, j*Cout + co] = w[co, c, kh, kw]
    """
    cout, cin, _, _ = w_oihw.shape
    w_hwio = jnp.transpose(w_oihw, (2, 3, 1, 0)).astype(jnp.float32)  # (3,3,Cin,Cout)
    wb = jnp.zeros((3, (ow + 2) * cin, ow * cout), jnp.float32)
    for kw in range(3):
        for j in range(ow):
            wb = wb.at[:, (j + kw) * cin:(j + kw + 1) * cin,
                       j * cout:(j + 1) * cout].set(w_hwio[:, kw])
    return wb


def block_forward(x_nchw, params):
    """x_nchw: (N, Cin, H, W) f32 -> (N, Cout, H-4, W-4) f32 (PyTorch Block forward)."""
    w1, b1, g1, be1, w2, b2, g2, be2 = params
    del b1, b2   # conv biases are exactly canceled by the following BN mean subtraction
    n, cin, h, w = x_nchw.shape
    cout = w1.shape[0]
    oh1, ow1 = h - 2, w - 2
    oh2, ow2 = h - 4, w - 4
    m1 = n * oh1
    m2 = m1 - 2                # conv2 sliding-window rows (incl. cross-image rows)
    l1, l2 = ow1 * cout, ow2 * cout

    # Layout plumbing in XLA (outside the kernel): NCHW -> lane-dense NHWC rows,
    # kh-im2col so conv1 is a single K=3*W*Cin matmul, banded weight slabs,
    # consolidated BN params, 0/1 fold matrices and the BN2 row mask.
    x_nhwc = jnp.transpose(x_nchw, (0, 2, 3, 1)).astype(jnp.float32)
    x_rows = x_nhwc.reshape(n, h, w * cin)
    x_im2col = jnp.concatenate(
        [x_rows[:, kh:kh + oh1, :].reshape(m1, w * cin) for kh in range(3)], axis=1)

    w1_cat = _banded_weight(w1, ow1).reshape(3 * w * cin, l1)       # (3*W*Cin, OW1*Cout)
    w2b = _banded_weight(w2, ow2)                                   # (3, OW1*Cout, OW2*Cout)
    gb = jnp.stack([g1, be1, g2, be2], axis=0).astype(jnp.float32)  # (4, Cout)

    fold = jnp.tile(jnp.eye(cout, dtype=jnp.float32), (ow1, 1))     # (L1, Cout)
    fold_t = fold.T                                                 # (Cout, L1)
    mask = ((jnp.arange(m2) % oh1) < oh2).astype(jnp.float32).reshape(m2, 1)

    kernel = _make_block_kernel(cnt1=float(n * oh1 * ow1),
                                cnt2=float(n * oh2 * ow2),
                                m2=m2, l2=l2)

    vmem = pl.BlockSpec(memory_space=pltpu.MemorySpace.VMEM)
    out_rows = pl.pallas_call(
        kernel,
        out_shape=jax.ShapeDtypeStruct((m2, l2), jnp.float32),
        in_specs=[vmem] * 7,
        out_specs=vmem,
    )(x_im2col, w1_cat, w2b, gb, fold, fold_t, mask)

    # Drop the (N-1)*2 cross-image garbage rows and restore NCHW.
    row_idx = (jnp.arange(n)[:, None] * oh1 + jnp.arange(oh2)[None, :]).reshape(-1)
    out = out_rows[row_idx].reshape(n, oh2, ow2, cout)
    return jnp.transpose(out, (0, 3, 1, 2))


def reference_forward(x_nchw, params):
    """Pure-JAX reference (matches the PyTorch module, biases included)."""
    w1, b1, g1, be1, w2, b2, g2, be2 = params

    def conv(x, w, b):
        y = lax.conv_general_dilated(
            x, w, window_strides=(1, 1), padding='VALID',
            dimension_numbers=('NCHW', 'OIHW', 'NCHW'))
        return y + b[None, :, None, None]

    def bn_relu(y, g, be):
        mean = y.mean(axis=(0, 2, 3), keepdims=True)
        var = ((y - mean) ** 2).mean(axis=(0, 2, 3), keepdims=True)
        yn = (y - mean) / jnp.sqrt(var + EPS)
        yn = yn * g[None, :, None, None] + be[None, :, None, None]
        return jnp.maximum(yn, 0.0)

    y = bn_relu(conv(x_nchw, w1, b1), g1, be1)
    y = bn_relu(conv(y, w2, b2), g2, be2)
    return y


if __name__ == "__main__":
    key = jax.random.PRNGKey(0)
    N, Cin, Cout, H, W = 2, 4, 8, 16, 16

    kx, kw1, kb1, kw2, kb2 = jax.random.split(key, 5)
    x = jax.random.normal(kx, (N, Cin, H, W), jnp.float32)

    # Conv2d weights in PyTorch OIHW convention; biases; BN gamma=1, beta=0.
    w1 = jax.random.normal(kw1, (Cout, Cin, 3, 3), jnp.float32) * 0.1
    b1 = jax.random.normal(kb1, (Cout,), jnp.float32) * 0.1
    w2 = jax.random.normal(kw2, (Cout, Cout, 3, 3), jnp.float32) * 0.1
    b2 = jax.random.normal(kb2, (Cout,), jnp.float32) * 0.1
    g1 = jnp.ones((Cout,), jnp.float32)
    be1 = jnp.zeros((Cout,), jnp.float32)
    g2 = jnp.ones((Cout,), jnp.float32)
    be2 = jnp.zeros((Cout,), jnp.float32)

    params = (w1, b1, g1, be1, w2, b2, g2, be2)

    out = jax.block_until_ready(jax.jit(block_forward)(x, params))
    ref = jax.block_until_ready(reference_forward(x, params))

    assert out.shape == (N, Cout, H - 4, W - 4), out.shape
    assert jnp.allclose(out, ref, atol=1e-4, rtol=1e-4), \
        float(jnp.max(jnp.abs(out - ref)))

    print("KERNEL_OK")
</pallas_src>

<mosaic_0001>
module attributes {stable_mosaic.version = 11 : i64} {
  func.func @block_kernel(%arg0: memref<28x192xf32, #tpu.memory_space<vmem>>, %arg1: memref<192x112xf32, #tpu.memory_space<vmem>>, %arg2: memref<3x112x96xf32, #tpu.memory_space<vmem>>, %arg3: memref<4x8xf32, #tpu.memory_space<vmem>>, %arg4: memref<112x8xf32, #tpu.memory_space<vmem>>, %arg5: memref<8x112xf32, #tpu.memory_space<vmem>>, %arg6: memref<26x1xf32, #tpu.memory_space<vmem>>, %arg7: memref<26x96xf32, #tpu.memory_space<vmem>>) attributes {dimension_semantics = [], scalar_prefetch = 0 : i64, scratch_operands = 0 : i64, tpu.core_type = #tpu.core_type<tc>} {
    %c0 = arith.constant 0 : index
    %c0_0 = arith.constant 0 : index
    %0 = vector.load %arg0[%c0, %c0_0] : memref<28x192xf32, #tpu.memory_space<vmem>>, vector<28x192xf32>
    %c0_1 = arith.constant 0 : index
    %c0_2 = arith.constant 0 : index
    %1 = vector.load %arg1[%c0_1, %c0_2] : memref<192x112xf32, #tpu.memory_space<vmem>>, vector<192x112xf32>
    %cst = arith.constant dense<0.000000e+00> : vector<28x112xf32>
    %2 = tpu.matmul %0, %1, %cst {dimension_numbers = #tpu.dot_dimension_numbers<[1], [0], [0], [1], [0, 0, 1, 1], [], []>} : vector<28x192xf32>, vector<192x112xf32>, vector<28x112xf32> -> vector<28x112xf32>
    %c0_3 = arith.constant 0 : index
    %c0_4 = arith.constant 0 : index
    %3 = vector.load %arg4[%c0_3, %c0_4] : memref<112x8xf32, #tpu.memory_space<vmem>>, vector<112x8xf32>
    %c0_5 = arith.constant 0 : index
    %c0_6 = arith.constant 0 : index
    %4 = vector.load %arg5[%c0_5, %c0_6] : memref<8x112xf32, #tpu.memory_space<vmem>>, vector<8x112xf32>
    %c0_7 = arith.constant 0 : index
    %c0_8 = arith.constant 0 : index
    %5 = vector.load %arg3[%c0_7, %c0_8] : memref<4x8xf32, #tpu.memory_space<vmem>>, vector<1x8xf32>
    %c1 = arith.constant 1 : index
    %c0_9 = arith.constant 0 : index
    %6 = vector.load %arg3[%c1, %c0_9] : memref<4x8xf32, #tpu.memory_space<vmem>>, vector<1x8xf32>
    %cst_10 = arith.constant dense<0.000000e+00> : vector<112xf32>
    %7 = vector.multi_reduction <add>, %2, %cst_10 [0] : vector<28x112xf32> to vector<112xf32>
    %8 = vector.shape_cast %7 : vector<112xf32> to vector<1x112xf32>
    %9 = arith.mulf %2, %2 : vector<28x112xf32>
    %cst_11 = arith.constant dense<0.000000e+00> : vector<112xf32>
    %10 = vector.multi_reduction <add>, %9, %cst_11 [0] : vector<28x112xf32> to vector<112xf32>
    %11 = vector.shape_cast %10 : vector<112xf32> to vector<1x112xf32>
    %cst_12 = arith.constant dense<0.000000e+00> : vector<1x8xf32>
    %12 = tpu.matmul %8, %3, %cst_12 {dimension_numbers = #tpu.dot_dimension_numbers<[1], [0], [0], [1], [0, 0, 1, 1], [], []>} : vector<1x112xf32>, vector<112x8xf32>, vector<1x8xf32> -> vector<1x8xf32>
    %cst_13 = arith.constant dense<0.000000e+00> : vector<1x8xf32>
    %13 = tpu.matmul %11, %3, %cst_13 {dimension_numbers = #tpu.dot_dimension_numbers<[1], [0], [0], [1], [0, 0, 1, 1], [], []>} : vector<1x112xf32>, vector<112x8xf32>, vector<1x8xf32> -> vector<1x8xf32>
    %cst_14 = arith.constant 3.920000e+02 : f32
    %14 = vector.broadcast %cst_14 : f32 to vector<1x8xf32>
    %15 = arith.divf %12, %14 : vector<1x8xf32>
    %cst_15 = arith.constant 3.920000e+02 : f32
    %16 = vector.broadcast %cst_15 : f32 to vector<1x8xf32>
    %17 = arith.divf %13, %16 : vector<1x8xf32>
    %18 = arith.mulf %15, %15 : vector<1x8xf32>
    %19 = arith.subf %17, %18 : vector<1x8xf32>
    %cst_16 = arith.constant 0.000000e+00 : f32
    %20 = vector.broadcast %cst_16 : f32 to vector<1x8xf32>
    %21 = arith.maximumf %19, %20 : vector<1x8xf32>
    %cst_17 = arith.constant 9.99999974E-6 : f32
    %22 = vector.broadcast %cst_17 : f32 to vector<1x8xf32>
    %23 = arith.addf %21, %22 : vector<1x8xf32>
    %24 = math.rsqrt %23 : vector<1x8xf32>
    %25 = arith.mulf %5, %24 : vector<1x8xf32>
    %26 = arith.mulf %15, %25 : vector<1x8xf32>
    %27 = arith.subf %6, %26 : vector<1x8xf32>
    %cst_18 = arith.constant dense<0.000000e+00> : vector<1x112xf32>
    %28 = tpu.matmul %25, %4, %cst_18 {dimension_numbers = #tpu.dot_dimension_numbers<[1], [0], [0], [1], [0, 0, 1, 1], [], []>} : vector<1x8xf32>, vector<8x112xf32>, vector<1x112xf32> -> vector<1x112xf32>
    %cst_19 = arith.constant dense<0.000000e+00> : vector<1x112xf32>
    %29 = tpu.matmul %27, %4, %cst_19 {dimension_numbers = #tpu.dot_dimension_numbers<[1], [0], [0], [1], [0, 0, 1, 1], [], []>} : vector<1x8xf32>, vector<8x112xf32>, vector<1x112xf32> -> vector<1x112xf32>
    %30 = vector.broadcast %28 : vector<1x112xf32> to vector<28x112xf32>
    %31 = arith.mulf %2, %30 : vector<28x112xf32>
    %32 = vector.broadcast %29 : vector<1x112xf32> to vector<28x112xf32>
    %33 = arith.addf %31, %32 : vector<28x112xf32>
    %cst_20 = arith.constant 0.000000e+00 : f32
    %34 = vector.broadcast %cst_20 : f32 to vector<28x112xf32>
    %35 = arith.maximumf %33, %34 : vector<28x112xf32>
    %36 = vector.extract_strided_slice %35 {offsets = [0, 0], sizes = [26, 112], strides = [1, 1]} : vector<28x112xf32> to vector<26x112xf32>
    %c0_21 = arith.constant 0 : index
    %c0_22 = arith.constant 0 : index
    %c0_23 = arith.constant 0 : index
    %37 = vector.load %arg2[%c0_21, %c0_22, %c0_23] : memref<3x112x96xf32, #tpu.memory_space<vmem>>, vector<1x112x96xf32>
    %38 = vector.shape_cast %37 : vector<1x112x96xf32> to vector<112x96xf32>
    %cst_24 = arith.constant dense<0.000000e+00> : vector<26x96xf32>
    %39 = tpu.matmul %36, %38, %cst_24 {dimension_numbers = #tpu.dot_dimension_numbers<[1], [0], [0], [1], [0, 0, 1, 1], [], []>} : vector<26x112xf32>, vector<112x96xf32>, vector<26x96xf32> -> vector<26x96xf32>
    %40 = vector.extract_strided_slice %35 {offsets = [1, 0], sizes = [26, 112], strides = [1, 1]} : vector<28x112xf32> to vector<26x112xf32>
    %c1_25 = arith.constant 1 : index
    %c0_26 = arith.constant 0 : index
    %c0_27 = arith.constant 0 : index
    %41 = vector.load %arg2[%c1_25, %c0_26, %c0_27] : memref<3x112x96xf32, #tpu.memory_space<vmem>>, vector<1x112x96xf32>
    %42 = vector.shape_cast %41 : vector<1x112x96xf32> to vector<112x96xf32>
    %cst_28 = arith.constant dense<0.000000e+00> : vector<26x96xf32>
    %43 = tpu.matmul %40, %42, %cst_28 {dimension_numbers = #tpu.dot_dimension_numbers<[1], [0], [0], [1], [0, 0, 1, 1], [], []>} : vector<26x112xf32>, vector<112x96xf32>, vector<26x96xf32> -> vector<26x96xf32>
    %44 = arith.addf %39, %43 : vector<26x96xf32>
    %45 = vector.extract_strided_slice %35 {offsets = [2, 0], sizes = [26, 112], strides = [1, 1]} : vector<28x112xf32> to vector<26x112xf32>
    %c2 = arith.constant 2 : index
    %c0_29 = arith.constant 0 : index
    %c0_30 = arith.constant 0 : index
    %46 = vector.load %arg2[%c2, %c0_29, %c0_30] : memref<3x112x96xf32, #tpu.memory_space<vmem>>, vector<1x112x96xf32>
    %47 = vector.shape_cast %46 : vector<1x112x96xf32> to vector<112x96xf32>
    %cst_31 = arith.constant dense<0.000000e+00> : vector<26x96xf32>
    %48 = tpu.matmul %45, %47, %cst_31 {dimension_numbers = #tpu.dot_dimension_numbers<[1], [0], [0], [1], [0, 0, 1, 1], [], []>} : vector<26x112xf32>, vector<112x96xf32>, vector<26x96xf32> -> vector<26x96xf32>
    %49 = arith.addf %44, %48 : vector<26x96xf32>
    %c0_32 = arith.constant 0 : index
    %c0_33 = arith.constant 0 : index
    %50 = vector.load %arg4[%c0_32, %c0_33] : memref<112x8xf32, #tpu.memory_space<vmem>>, vector<96x8xf32>
    %c0_34 = arith.constant 0 : index
    %c0_35 = arith.constant 0 : index
    %51 = vector.load %arg5[%c0_34, %c0_35] : memref<8x112xf32, #tpu.memory_space<vmem>>, vector<8x96xf32>
    %c0_36 = arith.constant 0 : index
    %c0_37 = arith.constant 0 : index
    %52 = vector.load %arg6[%c0_36, %c0_37] : memref<26x1xf32, #tpu.memory_space<vmem>>, vector<26x1xf32>
    %c2_38 = arith.constant 2 : index
    %c0_39 = arith.constant 0 : index
    %53 = vector.load %arg3[%c2_38, %c0_39] : memref<4x8xf32, #tpu.memory_space<vmem>>, vector<1x8xf32>
    %c3 = arith.constant 3 : index
    %c0_40 = arith.constant 0 : index
    %54 = vector.load %arg3[%c3, %c0_40] : memref<4x8xf32, #tpu.memory_space<vmem>>, vector<1x8xf32>
    %55 = vector.broadcast %52 : vector<26x1xf32> to vector<26x96xf32>
    %56 = arith.mulf %49, %55 : vector<26x96xf32>
    %cst_41 = arith.constant dense<0.000000e+00> : vector<96xf32>
    %57 = vector.multi_reduction <add>, %56, %cst_41 [0] : vector<26x96xf32> to vector<96xf32>
    %58 = vector.shape_cast %57 : vector<96xf32> to vector<1x96xf32>
    %59 = arith.mulf %49, %56 : vector<26x96xf32>
    %cst_42 = arith.constant dense<0.000000e+00> : vector<96xf32>
    %60 = vector.multi_reduction <add>, %59, %cst_42 [0] : vector<26x96xf32> to vector<96xf32>
    %61 = vector.shape_cast %60 : vector<96xf32> to vector<1x96xf32>
    %cst_43 = arith.constant dense<0.000000e+00> : vector<1x8xf32>
    %62 = tpu.matmul %58, %50, %cst_43 {dimension_numbers = #tpu.dot_dimension_numbers<[1], [0], [0], [1], [0, 0, 1, 1], [], []>} : vector<1x96xf32>, vector<96x8xf32>, vector<1x8xf32> -> vector<1x8xf32>
    %cst_44 = arith.constant dense<0.000000e+00> : vector<1x8xf32>
    %63 = tpu.matmul %61, %50, %cst_44 {dimension_numbers = #tpu.dot_dimension_numbers<[1], [0], [0], [1], [0, 0, 1, 1], [], []>} : vector<1x96xf32>, vector<96x8xf32>, vector<1x8xf32> -> vector<1x8xf32>
    %cst_45 = arith.constant 2.880000e+02 : f32
    %64 = vector.broadcast %cst_45 : f32 to vector<1x8xf32>
    %65 = arith.divf %62, %64 : vector<1x8xf32>
    %cst_46 = arith.constant 2.880000e+02 : f32
    %66 = vector.broadcast %cst_46 : f32 to vector<1x8xf32>
    %67 = arith.divf %63, %66 : vector<1x8xf32>
    %68 = arith.mulf %65, %65 : vector<1x8xf32>
    %69 = arith.subf %67, %68 : vector<1x8xf32>
    %cst_47 = arith.constant 0.000000e+00 : f32
    %70 = vector.broadcast %cst_47 : f32 to vector<1x8xf32>
    %71 = arith.maximumf %69, %70 : vector<1x8xf32>
    %cst_48 = arith.constant 9.99999974E-6 : f32
    %72 = vector.broadcast %cst_48 : f32 to vector<1x8xf32>
    %73 = arith.addf %71, %72 : vector<1x8xf32>
    %74 = math.rsqrt %73 : vector<1x8xf32>
    %75 = arith.mulf %53, %74 : vector<1x8xf32>
    %76 = arith.mulf %65, %75 : vector<1x8xf32>
    %77 = arith.subf %54, %76 : vector<1x8xf32>
    %cst_49 = arith.constant dense<0.000000e+00> : vector<1x96xf32>
    %78 = tpu.matmul %75, %51, %cst_49 {dimension_numbers = #tpu.dot_dimension_numbers<[1], [0], [0], [1], [0, 0, 1, 1], [], []>} : vector<1x8xf32>, vector<8x96xf32>, vector<1x96xf32> -> vector<1x96xf32>
    %cst_50 = arith.constant dense<0.000000e+00> : vector<1x96xf32>
    %79 = tpu.matmul %77, %51, %cst_50 {dimension_numbers = #tpu.dot_dimension_numbers<[1], [0], [0], [1], [0, 0, 1, 1], [], []>} : vector<1x8xf32>, vector<8x96xf32>, vector<1x96xf32> -> vector<1x96xf32>
    %80 = vector.broadcast %78 : vector<1x96xf32> to vector<26x96xf32>
    %81 = arith.mulf %49, %80 : vector<26x96xf32>
    %82 = vector.broadcast %79 : vector<1x96xf32> to vector<26x96xf32>
    %83 = arith.addf %81, %82 : vector<26x96xf32>
    %cst_51 = arith.constant 0.000000e+00 : f32
    %84 = vector.broadcast %cst_51 : f32 to vector<26x96xf32>
    %85 = arith.maximumf %83, %84 : vector<26x96xf32>
    %c0_52 = arith.constant 0 : index
    %c0_53 = arith.constant 0 : index
    %86 = vector.load %arg7[%c0_52, %c0_53] : memref<26x96xf32, #tpu.memory_space<vmem>>, vector<26x96xf32>
    tpu.vector_store %arg7[%c0_52, %c0_53], %85 {strides = array<i32>} : memref<26x96xf32, #tpu.memory_space<vmem>>, vector<26x96xf32>,
    return
  }
}

</mosaic_0001>

<bundles_post_ra>
// kernel: tile.9
= control target key start
LH: loop header
LB: loop body
LE: loop exit
PB: predicated region body
PF: predicated region fallthrough
CT: control target
= control target key end

     0   :  { %vm6_vm0 = vcmask 1043458   ;;  %vm10_vm1 = vcmask 1045508   ;;  %vm14_vm2 = vcmask 1047558   ;;  %s19_s6 = smov 3  ;;  %s22_s7 = smov 12  ;;  %vm16_vm3 = vcmask 64512   ;;  %s644_s0 = inlined_call_operand.vmem [shape: f32[14,8,8], index: 0, kind: input, shape index: {}]   ;;  %s645_s1 = inlined_call_operand.vmem [shape: f32[112,8], index: 1, kind: output, shape index: {}]  }
   0x1   :  { %v304_v0 = vld [vmem:[%s644_s0 + $0xd] ss:$16 sm:%s19_s6]   ;;  %s27_s12 = smov 48  ;;  %s32_s13 = smov 192  ;;  %vm38_vm4 = vcmask 917312   ;;  %vm60_vm5 = vcmask 851712  }
   0x2   :  { %v305_v1 = vld [vmem:[%s644_s0 + $0xd] ss:$16 sm:%s22_s7]   ;;  %s63_s18 = smov 3  ;;  %s66_s21 = smov 12  ;;  %vm82_vm6 = vcmask 786112   ;;  %vm104_vm7 = vcmask 720512  }
   0x3   :  { %v25_v2 = vsel %vm6_vm0, %v305_v1, %v304_v0  ;;  %v306_v3 = vld [vmem:[%s644_s0 + $0xd] ss:$16 sm:%s27_s12]   ;;  %v312_v6 = vld [vmem:[%s644_s0 + $0xb] ss:$16 sm:%s63_s18]   ;;  %s71_s22 = smov 48  ;;  %s76_s27 = smov 192 }
   0x4   :  { %v307_v4 = vld [vmem:[%s644_s0 + $0xd] ss:$16 sm:%s32_s13]   ;;  %v30_v5 = vsel %vm10_vm1, %v306_v3, %v25_v2  ;;  %v313_v8 = vld [vmem:[%s644_s0 + $0xb] ss:$16 sm:%s66_s21]   ;;  %s369_s28 = smov 104   ;;  %s41_s2 = smov 3 }
   0x5   :  { %v35_v7 = vsel %vm14_vm2, %v307_v4, %v30_v5  ;;  %v314_v9 = vld [vmem:[%s644_s0 + $0xb] ss:$16 sm:%s71_s22]   ;;  %v69_v10 = vsel %vm6_vm0, %v313_v8, %v312_v6  ;;  %s44_s3 = smov 12  ;;  %v308_v13 = vld [vmem:[%s644_s0 + $0xc] ss:$16 sm:%s41_s2]   ;;  %s49_s8 = smov 48 }
   0x6   :  { %36 = vrot.lane.b32.xlu0 %v35_v7, %s369_s28  ;;  %v315_v11 = vld [vmem:[%s644_s0 + $0xb] ss:$16 sm:%s76_s27]   ;;  %v74_v12 = vsel %vm10_vm1, %v314_v9, %v69_v10  ;;  %s54_s9 = smov 192  ;;  %s85_s14 = smov 3  ;;  %vm126_vm8 = vcmask 654912   ;;  %vm148_vm9 = vcmask 589312  }
   0x7   :  { %v309_v14 = vld [vmem:[%s644_s0 + $0xc] ss:$16 sm:%s44_s3]   ;;  %v79_v15 = vsel %vm14_vm2, %v315_v11, %v74_v12  ;;  %s370_s15 = smov 88   ;;  %v316_v20 = vld [vmem:[%s644_s0 + $0xa] ss:$16 sm:%s85_s14]   ;;  %s88_s18 = smov 12 }
   0x8   :  { %v47_v16 = vsel %vm6_vm0, %v309_v14, %v308_v13  ;;  %v310_v17 = vld [vmem:[%s644_s0 + $0xc] ss:$16 sm:%s49_s8]   ;;  %80 = vrot.lane.b32.xlu1 %v79_v15, %s370_s15  ;;  %s93_s19 = smov 48  ;;  %s98_s24 = smov 192  ;;  %vm170_vm10 = vcmask 523712   ;;  %vm192_vm11 = vcmask 458112  }
   0x9   :  { %v311_v18 = vld [vmem:[%s644_s0 + $0xc] ss:$16 sm:%s54_s9]   ;;  %v52_v19 = vsel %vm10_vm1, %v310_v17, %v47_v16  ;;  %v317_v21 = vld [vmem:[%s644_s0 + $0xa] ss:$16 sm:%s88_s18]   ;;  %s151_s27 = smov 3  ;;  %s154_s28 = smov 12 }
   0xa   :  { %v318_v22 = vld [vmem:[%s644_s0 + $0xa] ss:$16 sm:%s93_s19]   ;;  %v57_v23 = vsel %vm14_vm2, %v311_v18, %v52_v19  ;;  %v91_v24 = vsel %vm6_vm0, %v317_v21, %v316_v20  ;;  %v328_v27 = vld [vmem:[%s644_s0 + $0x7] ss:$16 sm:%s151_s27]   ;;  %s159_s4 = smov 48  ;;  %s164_s7 = smov 192 }
   0xb   :  { %v319_v25 = vld [vmem:[%s644_s0 + $0xa] ss:$16 sm:%s98_s24]   ;;  %v96_v26 = vsel %vm10_vm1, %v318_v22, %v91_v24  ;;  %v329_v28 = vld [vmem:[%s644_s0 + $0x7] ss:$16 sm:%s154_s28]   ;;  %s173_s8 = smov 3  ;;  %s371_s9 = smov 96  }
   0xc   :  { %v157_v29 = vsel %vm6_vm0, %v329_v28, %v328_v27  ;;  %v330_v30 = vld [vmem:[%s644_s0 + $0x7] ss:$16 sm:%s159_s4]   ;;  %v101_v31 = vsel %vm14_vm2, %v319_v25, %v96_v26  ;;  %v332_v32 = vld [vmem:[%s644_s0 + $0x6] ss:$16 sm:%s173_s8]   ;;  %s176_s12 = smov 12  ;;  %s181_s13 = smov 48 }
   0xd   :  { %v333_v33 = vld [vmem:[%s644_s0 + $0x6] ss:$16 sm:%s176_s12]   ;;  %s186_s16 = smov 192  ;;  %v162_v34 = vsel %vm10_vm1, %v330_v30, %v157_v29  ;;  %v331_v35 = vld [vmem:[%s644_s0 + $0x7] ss:$16 sm:%s164_s7]   ;;  %s217_s21 = smov 3 }
   0xe   :  { %58 = vrot.lane.b32.xlu0 %v57_v23, %s371_s9  ;;  %v179_v36 = vsel %vm6_vm0, %v333_v33, %v332_v32  ;;  %v334_v37 = vld [vmem:[%s644_s0 + $0x6] ss:$16 sm:%s181_s13]   ;;  %s220_s22 = smov 12  ;;  %s372_s23 = smov 80   ;;  %v167_v40 = vsel %vm14_vm2, %v331_v35, %v162_v34  ;;  %vm214_vm12 = vcmask 392512   ;;  %vm236_vm13 = vcmask 326912  }
   0xf   :  { %s225_s24 = smov 48  ;;  %v340_v38 = vld [vmem:[%s644_s0 + $0x4] ss:$16 sm:%s217_s21]   ;;  %s239_s29 = smov 3  ;;  %v184_v41 = vsel %vm10_vm1, %v334_v37, %v179_v36  ;;  %v335_v42 = vld [vmem:[%s644_s0 + $0x6] ss:$16 sm:%s186_s16]  }
  0x10   :  { %102 = vrot.lane.b32.xlu1 %v101_v31, %s372_s23  ;;  %v341_v39 = vld [vmem:[%s644_s0 + $0x4] ss:$16 sm:%s220_s22]   ;;  %s230_s3 = smov 192  ;;  %s242_s4 = smov 12  ;;  %v189_v47 = vsel %vm14_vm2, %v335_v42, %v184_v41  ;;  %vm258_vm14 = vcmask 261312   ;;  %vm280_vm15 = vcmask 195712  }
  0x11   :  { %v342_v43 = vld [vmem:[%s644_s0 + $0x4] ss:$16 sm:%s225_s24]   ;;  %s247_s7 = smov 48  ;;  %s252_s8 = smov 192  ;;  %v223_v44 = vsel %vm6_vm0, %v341_v39, %v340_v38  ;;  %v344_v45 = vld [vmem:[%s644_s0 + $0x3] ss:$16 sm:%s239_s29]  }
  0x12   :  { %v345_v46 = vld [vmem:[%s644_s0 + $0x3] ss:$16 sm:%s242_s4]   ;;  %s107_s13 = smov 3  ;;  %s110_s14 = smov 12  ;;  %v343_v48 = vld [vmem:[%s644_s0 + $0x4] ss:$16 sm:%s230_s3]   ;;  %v228_v52 = vsel %vm10_vm1, %v342_v43, %v223_v44 }
  0x13   :  { %s373_s15 = smov 56   ;;  %v320_v49 = vld [vmem:[%s644_s0 + $0x9] ss:$16 sm:%s107_s13]   ;;  %s115_s20 = smov 48  ;;  %v245_v53 = vsel %vm6_vm0, %v345_v46, %v344_v45  ;;  %v346_v54 = vld [vmem:[%s644_s0 + $0x3] ss:$16 sm:%s247_s7]   ;;  %v233_v62 = vsel %vm14_vm2, %v343_v48, %v228_v52 }
  0x14   :  { %s120_s21 = smov 192  ;;  %v321_v50 = vld [vmem:[%s644_s0 + $0x9] ss:$16 sm:%s110_s14]   ;;  %s283_s26 = smov 3  ;;  %v347_v57 = vld [vmem:[%s644_s0 + $0x3] ss:$16 sm:%s252_s8]   ;;  %v250_v63 = vsel %vm10_vm1, %v346_v54, %v245_v53 }
  0x15   :  { %v322_v51 = vld [vmem:[%s644_s0 + $0x9] ss:$16 sm:%s115_s20]   ;;  %v113_v55 = vsel %vm6_vm0, %v321_v50, %v320_v49  ;;  %s286_s2 = smov 12  ;;  %s374_s3 = smov 48   ;;  %v352_v60 = vld [vmem:[%s644_s0 + $0x1] ss:$16 sm:%s283_s26]   ;;  %v255_v7 = vsel %vm14_vm2, %v347_v57, %v250_v63 }
  0x16   :  { %168 = vrot.lane.b32.xlu0 %v167_v40, %s373_s15  ;;  %v323_v56 = vld [vmem:[%s644_s0 + $0x9] ss:$16 sm:%s120_s21]   ;;  %v118_v58 = vsel %vm10_vm1, %v322_v51, %v113_v55  ;;  %s291_s6 = smov 48  ;;  %s129_s11 = smov 3 }
  0x17   :  { %v123_v59 = vsel %vm14_vm2, %v323_v56, %v118_v58  ;;  %v353_v61 = vld [vmem:[%s644_s0 + $0x1] ss:$16 sm:%s286_s2]   ;;  %s132_s12 = smov 12  ;;  %s375_s13 = smov 72   ;;  %v324_v0 = vld [vmem:[%s644_s0 + $0x8] ss:$16 sm:%s129_s11]  }
  0x18   :  { %190 = vrot.lane.b32.xlu1 %v189_v47, %s374_s3  ;;  %124 = vrot.lane.b32.xlu2 %v123_v59, %s375_s13  ;;  %s137_s16 = smov 48  ;;  %s142_s17 = smov 192  ;;  %v325_v1 = vld [vmem:[%s644_s0 + $0x8] ss:$16 sm:%s132_s12]   ;;  %v289_v3 = vsel %vm6_vm0, %v353_v61, %v352_v60 }
  0x19   :  { %v326_v2 = vld [vmem:[%s644_s0 + $0x8] ss:$16 sm:%s137_s16]   ;;  %s195_s22 = smov 3  ;;  %v354_v4 = vld [vmem:[%s644_s0 + $0x1] ss:$16 sm:%s291_s6]   ;;  %s296_s25 = smov 192  ;;  %v135_v5 = vsel %vm6_vm0, %v325_v1, %v324_v0 }
  0x1a   :  { %v327_v6 = vld [vmem:[%s644_s0 + $0x8] ss:$16 sm:%s142_s17]   ;;  %s198_s28 = smov 12  ;;  %s376_s29 = smov 32   ;;  %v140_v8 = vsel %vm10_vm1, %v326_v2, %v135_v5  ;;  %v336_v9 = vld [vmem:[%s644_s0 + $0x5] ss:$16 sm:%s195_s22]   ;;  %v294_v11 = vsel %vm10_vm1, %v354_v4, %v289_v3 }
  0x1b   :  { %v337_v10 = vld [vmem:[%s644_s0 + $0x5] ss:$16 sm:%s198_s28]   ;;  %s203_s5 = smov 48  ;;  %v355_v12 = vld [vmem:[%s644_s0 + $0x1] ss:$16 sm:%s296_s25]   ;;  %v145_v13 = vsel %vm14_vm2, %v327_v6, %v140_v8  ;;  %s377_s8 = smov 24  }
  0x1c   :  { %v201_v14 = vsel %vm6_vm0, %v337_v10, %v336_v9  ;;  %v338_v15 = vld [vmem:[%s644_s0 + $0x5] ss:$16 sm:%s203_s5]   ;;  %s208_s11 = smov 192  ;;  %v299_v16 = vsel %vm14_vm2, %v355_v12, %v294_v11  ;;  %s378_s12 = smov 64  }
  0x1d   :  { %s261_s13 = smov 3  ;;  %s264_s14 = smov 12  ;;  %v206_v17 = vsel %vm10_vm1, %v338_v15, %v201_v14  ;;  %v339_v18 = vld [vmem:[%s644_s0 + $0x5] ss:$16 sm:%s208_s11]  }
  0x1e   :  { %234 = vrot.lane.b32.xlu0 %v233_v62, %s376_s29  ;;  %s379_s17 = smov 8   ;;  %v348_v19 = vld [vmem:[%s644_s0 + $0x2] ss:$16 sm:%s261_s13]   ;;  %s269_s22 = smov 48  ;;  %v211_v21 = vsel %vm14_vm2, %v339_v18, %v206_v17 }
  0x1f   :  { %v349_v20 = vld [vmem:[%s644_s0 + $0x2] ss:$16 sm:%s264_s14]   ;;  %s274_s25 = smov 192  ;;  %s380_s26 = smov 40  }
  0x20   :  { %256 = vrot.lane.b32.xlu1 %v255_v7, %s377_s8  ;;  %146 = vrot.lane.b32.xlu2 %v145_v13, %s378_s12  ;;  %v267_v22 = vsel %vm6_vm0, %v349_v20, %v348_v19  ;;  %v350_v23 = vld [vmem:[%s644_s0 + $0x2] ss:$16 sm:%s269_s22]   ;;  %s381_s29 = smov 16   ;;  %s2_s30 = smov 3 }
  0x21   :  { %v272_v24 = vsel %vm10_vm1, %v350_v23, %v267_v22  ;;  %v351_v25 = vld [vmem:[%s644_s0 + $0x2] ss:$16 sm:%s274_s25]   ;;  %s4_s2 = smov 12  ;;  %s8_s3 = smov 48  ;;  %v3_v27 = vld [vmem:[%s644_s0] ss:$16 sm:%s2_s30]  }
  0x22   :  { %v277_v26 = vsel %vm14_vm2, %v351_v25, %v272_v24  ;;  %s12_s4 = smov 192  ;;  %v5_v28 = vld [vmem:[%s644_s0] ss:$16 sm:%s4_s2]  }
  0x23   :  { %v7_v29 = vsel %vm6_vm0, %v5_v28, %v3_v27  ;;  %v9_v30 = vld [vmem:[%s644_s0] ss:$16 sm:%s8_s3]   ;;  %vm302_vm0 = vcmask 130112  }
  0x24   :  { %v11_v31 = vsel %vm10_vm1, %v9_v30, %v7_v29  ;;  %v13_v32 = vld [vmem:[%s644_s0] ss:$16 sm:%s12_s4]  }
  0x25   :  { %v15_v33 = vsel %vm14_vm2, %v13_v32, %v11_v31 }
  0x26   :  { %300 = vrot.lane.b32.xlu0 %v299_v16, %s379_s17  ;;  %17 = vst.msk [vmem:[%s645_s1] sm:$0xff] %vm16_vm3, %v15_v33  }
  0x28   :  { %212 = vrot.lane.b32.xlu2 %v211_v21, %s380_s26 }
  0x30   :  { %278 = vrot.lane.b32.xlu2 %v277_v26, %s381_s29 }
  0x72   :  { %v125_v34 = vpop.permute.xlu2 %124  }
  0x78   :  { %v37_v35 = vpop.permute.xlu0 %36  }
  0x79   :  { %39 = vst.msk [vmem:[%s645_s1] sm:$0xff] %vm38_vm4, %v37_v35  }
  0x7a   :  { %v81_v36 = vpop.permute.xlu1 %80   ;;  %v147_v37 = vpop.permute.xlu2 %146  }
  0x80   :  { %v59_v38 = vpop.permute.xlu0 %58  }
  0x81   :  { %61 = vst.msk [vmem:[%s645_s1] sm:$0xff] %vm60_vm5, %v59_v38  }
  0x82   :  { %83 = vst.msk [vmem:[%s645_s1] sm:$0xff] %vm82_vm6, %v81_v36   ;;  %v103_v39 = vpop.permute.xlu1 %102   ;;  %v213_v40 = vpop.permute.xlu2 %212  }
  0x83   :  { %105 = vst.msk [vmem:[%s645_s1] sm:$0xff] %vm104_vm7, %v103_v39  }
  0x84   :  { %127 = vst.msk [vmem:[%s645_s1] sm:$0xff] %vm126_vm8, %v125_v34  }
  0x85   :  { %149 = vst.msk [vmem:[%s645_s1] sm:$0xff] %vm148_vm9, %v147_v37  }
  0x88   :  { %v169_v41 = vpop.permute.xlu0 %168  }
  0x89   :  { %171 = vst.msk [vmem:[%s645_s1] sm:$0xff] %vm170_vm10, %v169_v41  }
  0x8a   :  { %v191_v42 = vpop.permute.xlu1 %190   ;;  %v279_v43 = vpop.permute.xlu2 %278  }
  0x8b   :  { %193 = vst.msk [vmem:[%s645_s1] sm:$0xff] %vm192_vm11, %v191_v42  }
  0x8c   :  { %215 = vst.msk [vmem:[%s645_s1] sm:$0xff] %vm214_vm12, %v213_v40  }
  0x90   :  { %v235_v44 = vpop.permute.xlu0 %234  }
  0x91   :  { %237 = vst.msk [vmem:[%s645_s1] sm:$0xff] %vm236_vm13, %v235_v44  }
  0x92   :  { %v257_v45 = vpop.permute.xlu1 %256  }
  0x93   :  { %259 = vst.msk [vmem:[%s645_s1] sm:$0xff] %vm258_vm14, %v257_v45  }
  0x94   :  { %281 = vst.msk [vmem:[%s645_s1] sm:$0xff] %vm280_vm15, %v279_v43  }
  0x98   :  { %v301_v46 = vpop.permute.xlu0 %300  }
  0x99   :  { %303 = vst.msk [vmem:[%s645_s1] sm:$0xff] %vm302_vm0, %v301_v46  }

// kernel: block_forward.1
= control target key start
LH: loop header
LB: loop body
LE: loop exit
PB: predicated region body
PF: predicated region fallthrough
CT: control target
= control target key end

     0   :  { %vm58_vm0 = vcmask 523264   ;;  %vm146_vm1 = vcmask 916480   ;;  %vm152_vm2 = vcmask 912384   ;;  %vm250_vm7 = vcmask 64512   ;;  %s1290_s1 = inlined_call_operand.vmem [shape: f32[192,112], index: 1, kind: input, shape index: {}]   ;;  %s1291_s0 = inlined_call_operand.vmem [shape: f32[28,192], index: 0, kind: input, shape index: {}]   ;;  %s1292_s4 = inlined_call_operand.vmem [shape: f32[112,8], index: 4, kind: input, shape index: {}]   ;;  %s1293_s5 = inlined_call_operand.vmem [shape: f32[8,112], index: 5, kind: input, shape index: {}]   ;;  %s1294_s2 = inlined_call_operand.vmem [shape: f32[3,112,96], index: 2, kind: input, shape index: {}]   ;;  %s1295_s3 = inlined_call_operand.vmem [shape: f32[4,8], index: 3, kind: input, shape index: {}]   ;;  %s1296_s6 = inlined_call_operand.vmem [shape: f32[26,1], index: 6, kind: input, shape index: {}]   ;;  %s1297_s7 = inlined_call_operand.vmem [shape: f32[26,96], index: 7, kind: output, shape index: {}]  }
   0x1   :  { %v49_v0 = vld [vmem:[%s1290_s1 + $0x78] sm:$0xff]  ;;  %v48_v1 = vld [vmem:[%s1290_s1 + $0x70] sm:$0xff]  ;;  %v47_v2 = vld [vmem:[%s1290_s1 + $0x68] sm:$0xff]  ;;  %vm344_vm8 = vcmask 1046528   ;;  %vm441_vm9 = vcmask 1045504   ;;  %vm532_vm10 = vcmask 785408  }
   0x2   :  { %71 = vmatpush.msra.mxu0 %v49_v0  ;;  %v57_v3 = vld [vmem:[%s1290_s1 + $0xb8] sm:$0xff]  ;;  %v56_v4 = vld [vmem:[%s1290_s1 + $0xb0] sm:$0xff]  ;;  %v46_v5 = vld [vmem:[%s1290_s1 + $0x60] sm:$0xff]  ;;  %vm538_vm11 = vcmask 779264  }
   0x3   :  { %108 = vmatpush.msra.mxu1 %v57_v3  ;;  %v55_v6 = vld [vmem:[%s1290_s1 + $0xa8] sm:$0xff]  ;;  %v45_v7 = vld [vmem:[%s1290_s1 + $0x58] sm:$0xff]  ;;  %v54_v8 = vld [vmem:[%s1290_s1 + $0xa0] sm:$0xff] }
   0x4   :  { %72 = vmatpush.msra.mxu0 %v48_v1  ;;  %v44_v9 = vld [vmem:[%s1290_s1 + $0x50] sm:$0xff]  ;;  %v53_v10 = vld [vmem:[%s1290_s1 + $0x98] sm:$0xff]  ;;  %v43_v11 = vld [vmem:[%s1290_s1 + $0x48] sm:$0xff] }
   0x5   :  { %109 = vmatpush.msra.mxu1 %v56_v4  ;;  %v52_v12 = vld [vmem:[%s1290_s1 + $0x90] sm:$0xff]  ;;  %v42_v13 = vld [vmem:[%s1290_s1 + $0x40] sm:$0xff]  ;;  %v51_v14 = vld [vmem:[%s1290_s1 + $0x88] sm:$0xff] }
   0x6   :  { %73 = vmatpush.msra.mxu0 %v47_v2  ;;  %v41_v15 = vld [vmem:[%s1290_s1 + $0x38] sm:$0xff]  ;;  %v50_v16 = vld [vmem:[%s1290_s1 + $0x80] sm:$0xff]  ;;  %v40_v17 = vld [vmem:[%s1290_s1 + $0x30] sm:$0xff] }
   0x7   :  { %110 = vmatpush.msra.mxu1 %v55_v6  ;;  %v27_v18 = vld [vmem:[%s1291_s0 + $0x8] sm:$0xff]  ;;  %v38_v20 = vld [vmem:[%s1290_s1 + $0x20] sm:$0xff]  ;;  %v37_v21 = vld [vmem:[%s1290_s1 + $0x18] sm:$0xff] }
   0x8   :  { %74 = vmatpush.msra.mxu0 %v46_v5  ;;  %v39_v19 = vld [vmem:[%s1290_s1 + $0x28] sm:$0xff]  ;;  %v36_v22 = vld [vmem:[%s1290_s1 + $0x10] sm:$0xff]  ;;  %v29_v23 = vld [vmem:[%s1291_s0 + $0x18] sm:$0xff] }
   0x9   :  { %111 = vmatpush.msra.mxu1 %v54_v8  ;;  %v35_v24 = vld [vmem:[%s1290_s1 + $0x8] sm:$0xff]  ;;  %v34_v25 = vld [vmem:[%s1290_s1] sm:$0xff]  ;;  %v28_v28 = vld [vmem:[%s1291_s0 + $0x10] sm:$0xff] }
   0xa   :  { %75 = vmatpush.msra.mxu0 %v45_v7  ;;  %v26_v26 = vld [vmem:[%s1291_s0] sm:$0xff]  ;;  %v31_v27 = vld [vmem:[%s1291_s0 + $0x28] sm:$0xff]  ;;  %v33_v29 = vld [vmem:[%s1291_s0 + $0x38] sm:$0xf] }
   0xb   :  { %112 = vmatpush.msra.mxu1 %v53_v10  ;;  %v30_v30 = vld [vmem:[%s1291_s0 + $0x20] sm:$0xff]  ;;  %v32_v31 = vld [vmem:[%s1291_s0 + $0x30] sm:$0xf]  ;;  %v142_v32 = vld [vmem:[%s1292_s4 + $0x68] sm:$0xff] }
   0xc   :  { %76 = vmatpush.msra.mxu0 %v44_v9  ;;  %183 = vmatpush.msra.mxu2 %v142_v32  ;;  %v141_v33 = vld [vmem:[%s1292_s4 + $0x60] sm:$0xff]  ;;  %v921_v34 = vld [vmem:[%s1292_s4 + $0x58] sm:$0xff]  ;;  %v928_v35 = vld [vmem:[%s1292_s4 + $0x50] sm:$0xff] }
   0xd   :  { %113 = vmatpush.msra.mxu1 %v52_v12  ;;  %206 = vmatpush.msra.mxu3 %v142_v32  ;;  %v935_v36 = vld [vmem:[%s1292_s4 + $0x48] sm:$0xff]  ;;  %v942_v38 = vld [vmem:[%s1292_s4 + $0x40] sm:$0xff]  ;;  %v949_v39 = vld [vmem:[%s1292_s4 + $0x38] sm:$0xff] }
   0xe   :  { %77 = vmatpush.msra.mxu0 %v43_v11  ;;  %184 = vmatpush.msra.mxu2 %v141_v33  ;;  %v956_v40 = vld [vmem:[%s1292_s4 + $0x30] sm:$0xff]  ;;  %v963_v41 = vld [vmem:[%s1292_s4 + $0x28] sm:$0xff]  ;;  %v968_v42 = vld [vmem:[%s1292_s4 + $0x20] sm:$0xff] }
   0xf   :  { %114 = vmatpush.msra.mxu1 %v51_v14  ;;  %207 = vmatpush.msra.mxu3 %v141_v33  ;;  %v975_v44 = vld [vmem:[%s1292_s4 + $0x18] sm:$0xff]  ;;  %v982_v46 = vld [vmem:[%s1292_s4 + $0x10] sm:$0xff]  ;;  %v989_v47 = vld [vmem:[%s1292_s4 + $0x8] sm:$0xff] }
  0x10   :  { %78 = vmatpush.msra.mxu0 %v42_v13  ;;  %185 = vmatpush.msra.mxu2 %v921_v34  ;;  %v996_v48 = vld [vmem:[%s1292_s4] sm:$0xff] }
  0x11   :  { %115 = vmatpush.msra.mxu1 %v50_v16  ;;  %208 = vmatpush.msra.mxu3 %v921_v34 }
  0x12   :  { %79 = vmatpush.msra.mxu0 %v41_v15  ;;  %704 = vmatmul.msk.f32.vlgmr.msra.gmra.mxu1 %vm58_vm0, %v27_v18 }
  0x13   :  { %186 = vmatpush.msra.mxu2 %v928_v35  ;;  %209 = vmatpush.msra.mxu3 %v928_v35 }
  0x14   :  { %80 = vmatpush.msra.mxu0 %v40_v17 }
  0x15   :  { %187 = vmatpush.msra.mxu2 %v935_v36  ;;  %210 = vmatpush.msra.mxu3 %v935_v36 }
  0x16   :  { %81 = vmatpush.msra.mxu0 %v39_v19 }
  0x17   :  { %188 = vmatpush.msra.mxu2 %v942_v38  ;;  %211 = vmatpush.msra.mxu3 %v942_v38 }
  0x18   :  { %82 = vmatpush.msra.mxu0 %v38_v20 }
  0x19   :  { %189 = vmatpush.msra.mxu2 %v949_v39  ;;  %212 = vmatpush.msra.mxu3 %v949_v39 }
  0x1a   :  { %83 = vmatpush.msra.mxu0 %v37_v21  ;;  %705 = vmatmul.msk.f32.gmra.mxu1 %vm58_vm0, %v29_v23 }
  0x1b   :  { %190 = vmatpush.msra.mxu2 %v956_v40  ;;  %213 = vmatpush.msra.mxu3 %v956_v40 }
  0x1c   :  { %84 = vmatpush.msra.mxu0 %v36_v22 }
  0x1d   :  { %191 = vmatpush.msra.mxu2 %v963_v41  ;;  %214 = vmatpush.msra.mxu3 %v963_v41 }
  0x1e   :  { %85 = vmatpush.msra.mxu0 %v35_v24  ;;  %v769_v24 = vmov 392.0  }
  0x1f   :  { %192 = vmatpush.msra.mxu2 %v968_v42  ;;  %215 = vmatpush.msra.mxu3 %v968_v42  ;;  %761 = vrcp.f32 %v769_v24 }
  0x20   :  { %86 = vmatpush.msra.mxu0 %v34_v25 }
  0x21   :  { %87 = vmatmul.f32.vlgmr.msra.gmra.mxu0 %v26_v26  ;;  %193 = vmatpush.msra.mxu2 %v975_v44 }
  0x22   :  { %706 = vmatmul.msk.f32.gmra.mxu1 %vm58_vm0, %v31_v27  ;;  %216 = vmatpush.msra.mxu3 %v975_v44 }
  0x23   :  { %194 = vmatpush.msra.mxu2 %v982_v46 }
  0x24   :  { %217 = vmatpush.msra.mxu3 %v982_v46 }
  0x25   :  { %195 = vmatpush.msra.mxu2 %v989_v47  ;;  %v762_v25 = vpop.eup %761 }
  0x26   :  { %218 = vmatpush.msra.mxu3 %v989_v47  ;;  %v225_v26 = vmul.f32 392.0, %v762_v25  ;;  %vm229_vm3 = vweird.f32 %v762_v25 }
  0x27   :  { %196 = vmatpush.msra.mxu2 %v996_v48 }
  0x28   :  { %219 = vmatpush.msra.mxu3 %v996_v48  ;;  %v226_v27 = vsub.f32 1.0, %v225_v26  ;;  %v316_v26 = vld [vmem:[%s1294_s2 + $0x28] sm:$0xff] }
  0x29   :  { %90 = vmatmul.f32.gmra.mxu0 %v28_v28 }
  0x2a   :  { %707 = vmatmul.msk.f32.gmra.mxu1 %vm58_vm0, %v33_v29  ;;  %v227_v28 = vmul.f32 %v762_v25, %v226_v27  ;;  %v1033_v29 = vld [vmem:[%s1293_s5] sm:$0xff] }
  0x2b   :  { %269 = vmatpush.msrb.mxu2 %v1033_v29  ;;  %292 = vmatpush.msrb.mxu3 %v1033_v29  ;;  %v718_v27 = vld [vmem:[%s1294_s2 + $0xa0] sm:$0xff] }
  0x31   :  { %93 = vmatmul.f32.gmra.mxu0 %v30_v30  ;;  %v228_v30 = vadd.f32 %v762_v25, %v227_v28  ;;  %v740_v28 = vld [vmem:[%s1294_s2 + $0x110] sm:$0xff] }
  0x39   :  { %96 = vmatmul.f32.gmra.mxu0 %v32_v31  ;;  %v230_v31 = vsel %vm229_vm3, %v762_v25, %v228_v30  ;;  %v315_v30 = vld [vmem:[%s1294_s2 + $0x20] sm:$0xff] }
  0x8f   :  { %v117_v37 = vpop.f32.mrf.mxu1 }
  0x97   :  { %v120_v45 = vpop.f32.mrf.mxu1 }
  0x9e   :  { %v88_v43 = vpop.f32.mrf.mxu0 }
  0x9f   :  { %v123_v50 = vpop.f32.mrf.mxu1  ;;  %v1004_v53 = vadd.f32 %v117_v37, %v88_v43 }
  0xa1   :  { %v161_v56 = vmul.f32 %v1004_v53, %v1004_v53  ;;  %v147_v60 = vsel %vm146_vm1, %v1004_v53, 0.0 }
  0xa3   :  { %v165_v1 = vsel %vm146_vm1, %v161_v56, 0.0  ;;  %v724_v56 = vld [vmem:[%s1294_s2 + $0xd0] sm:$0xff] }
  0xa6   :  { %v91_v49 = vpop.f32.mrf.mxu0 }
  0xa7   :  { %v1002_v51 = vadd.f32 %v120_v45, %v91_v49  ;;  %v126_v59 = vpop.f32.mrf.mxu1  ;;  %v324_v49 = vld [vmem:[%s1294_s2 + $0x68] sm:$0xff] }
  0xa8   :  { %399 = vmatpush.msrb.mxu0 %v324_v49  ;;  %v715_v49 = vld [vmem:[%s1294_s2 + $0x88] sm:$0xff] }
  0xa9   :  { %v162_v55 = vmul.f32 %v1002_v51, %v1002_v51  ;;  %v148_v57 = vsel %vm146_vm1, %v1002_v51, 0.0 }
  0xaa   :  { %v149_v63 = vadd.f32 %v148_v57, %v147_v60  ;;  %v723_v60 = vld [vmem:[%s1294_s2 + $0xc8] sm:$0xff] }
  0xab   :  { %v166_v61 = vsel %vm146_vm1, %v162_v55, 0.0  ;;  %v747_v55 = vld [vmem:[%s1294_s2 + $0x148] sm:$0xff] }
  0xac   :  { %v167_v4 = vadd.f32 %v166_v61, %v165_v1  ;;  %v745_v61 = vld [vmem:[%s1294_s2 + $0x138] sm:$0xff]  ;;  %v744_v1 = vld [vmem:[%s1294_s2 + $0x130] sm:$0xff] }
  0xae   :  { %v94_v52 = vpop.f32.mrf.mxu0 }
  0xaf   :  { %v1006_v54 = vadd.f32 %v123_v50, %v94_v52  ;;  %v725_v50 = vld [vmem:[%s1294_s2 + $0xd8] sm:$0xff]  ;;  %v323_v52 = vld [vmem:[%s1294_s2 + $0x60] sm:$0xff] }
  0xb0   :  { %362 = vmatpush.msrb.mxu1 %v725_v50  ;;  %400 = vmatpush.msrb.mxu0 %v323_v52  ;;  %v737_v50 = vld [vmem:[%s1294_s2 + $0xf8] sm:$0xff]  ;;  %v312_v52 = vld [vmem:[%s1294_s2 + $0x8] sm:$0xff] }
  0xb1   :  { %v163_v58 = vmul.f32 %v1006_v54, %v1006_v54  ;;  %v150_v62 = vsel %vm146_vm1, %v1006_v54, 0.0 }
  0xb2   :  { %v151_v5 = vadd.f32 %v150_v62, %v149_v63  ;;  %363 = vmatpush.msrb.mxu1 %v724_v56  ;;  %v321_v63 = vld [vmem:[%s1294_s2 + $0x50] sm:$0xff] }
  0xb3   :  { %v168_v2 = vsel %vm146_vm1, %v163_v58, 0.0  ;;  %v322_v58 = vld [vmem:[%s1294_s2 + $0x58] sm:$0xff]  ;;  %v736_v56 = vld [vmem:[%s1294_s2 + $0xf0] sm:$0xff] }
  0xb4   :  { %v169_v8 = vadd.f32 %v168_v2, %v167_v4  ;;  %401 = vmatpush.msrb.mxu0 %v322_v58  ;;  %364 = vmatpush.msrb.mxu1 %v723_v60  ;;  %v320_v4 = vld [vmem:[%s1294_s2 + $0x48] sm:$0xff]  ;;  %v713_v58 = vld [vmem:[%s1294_s2 + $0x78] sm:$0xff]  ;;  %v712_v60 = vld [vmem:[%s1294_s2 + $0x70] sm:$0xff] }
  0xb6   :  { %v97_v0 = vpop.f32.mrf.mxu0  ;;  %402 = vmatpush.msrb.mxu0 %v321_v63 }
  0xb7   :  { %v1023_v3 = vadd.f32 %v126_v59, %v97_v0  ;;  %v746_v59 = vld [vmem:[%s1294_s2 + $0x140] sm:$0xff] }
  0xb8   :  { %v722_v0 = vld [vmem:[%s1294_s2 + $0xc0] sm:$0xff]  ;;  %403 = vmatpush.msrb.mxu0 %v320_v4 }
  0xb9   :  { %v153_v6 = vsel %vm152_vm2, %v1023_v3, 0.0  ;;  %v164_v7 = vmul.f32 %v1023_v3, %v1023_v3  ;;  %365 = vmatpush.msrb.mxu1 %v722_v0 }
  0xba   :  { %v154_v9 = vadd.f32 %v153_v6, %v151_v5  ;;  %v721_v5 = vld [vmem:[%s1294_s2 + $0xb8] sm:$0xff]  ;;  %v743_v6 = vld [vmem:[%s1294_s2 + $0x128] sm:$0xff] }
  0xbb   :  { %v170_v10 = vsel %vm152_vm2, %v164_v7, 0.0  ;;  %v319_v7 = vld [vmem:[%s1294_s2 + $0x40] sm:$0xff]  ;;  %366 = vmatpush.msrb.mxu1 %v721_v5  ;;  %v505_v5 = vld [vmem:[%s1296_s6 + $0x18] sm:$0x3] }
  0xbc   :  { %v155_v11 = vrot.slane %v154_v9, 4  ;;  %v171_v12 = vadd.f32 %v170_v10, %v169_v8  ;;  %v720_v8 = vld [vmem:[%s1294_s2 + $0xb0] sm:$0xff]  ;;  %v318_v10 = vld [vmem:[%s1294_s2 + $0x38] sm:$0xff]  ;;  %404 = vmatpush.msrb.mxu0 %v319_v7 }
  0xbd   :  { %367 = vmatpush.msrb.mxu1 %v720_v8 }
  0xbe   :  { %v156_v13 = vadd.f32 %v155_v11, %v154_v9  ;;  %v172_v14 = vrot.slane %v171_v12, 4  ;;  %v742_v9 = vld [vmem:[%s1294_s2 + $0x120] sm:$0xff]  ;;  %v719_v11 = vld [vmem:[%s1294_s2 + $0xa8] sm:$0xff]  ;;  %405 = vmatpush.msrb.mxu0 %v318_v10 }
  0xbf   :  { %368 = vmatpush.msrb.mxu1 %v719_v11 }
  0xc0   :  { %v157_v15 = vrot.slane %v156_v13, 2  ;;  %v173_v16 = vadd.f32 %v172_v14, %v171_v12  ;;  %v741_v12 = vld [vmem:[%s1294_s2 + $0x118] sm:$0xff] }
  0xc1   :  { %369 = vmatpush.msrb.mxu1 %v718_v27 }
  0xc2   :  { %v158_v17 = vadd.f32 %v157_v15, %v156_v13  ;;  %v174_v18 = vrot.slane %v173_v16, 2  ;;  %v317_v13 = vld [vmem:[%s1294_s2 + $0x30] sm:$0xff] }
  0xc3   :  { %406 = vmatpush.msrb.mxu0 %v317_v13 }
  0xc4   :  { %v159_v19 = vrot.slane %v158_v17, 1  ;;  %v175_v20 = vadd.f32 %v174_v18, %v173_v16 }
  0xc5   :  { %407 = vmatpush.msrb.mxu0 %v316_v26 }
  0xc6   :  { %v160_v21 = vadd.f32 %v159_v19, %v158_v17  ;;  %v176_v22 = vrot.slane %v175_v20, 1  ;;  %v144_v19 = vld [vmem:[%s1295_s3] sm:$0x1] }
  0xc7   :  { %408 = vmatpush.msrb.mxu0 %v315_v30 }
  0xc8   :  { %708 = vmatmul.msk.f32.vlgmr.msra.gmra.mxu2 %vm146_vm1, %v160_v21  ;;  %v177_v23 = vadd.f32 %v176_v22, %v175_v20 }
  0xc9   :  { %459 = vmatpush.msra.mxu2 %v747_v55  ;;  %v714_v55 = vld [vmem:[%s1294_s2 + $0x80] sm:$0xff] }
  0xca   :  { %709 = vmatmul.msk.f32.vlgmr.msra.gmra.mxu3 %vm146_vm1, %v177_v23  ;;  %v145_v23 = vld [vmem:[%s1295_s3 + $0x1] sm:$0x1] }
  0xcb   :  { %571 = vmatpush.msra.mxu3 %v921_v34  ;;  %460 = vmatpush.msra.mxu2 %v746_v59  ;;  %v735_v59 = vld [vmem:[%s1294_s2 + $0xe8] sm:$0xff] }
  0xcd   :  { %572 = vmatpush.msra.mxu3 %v928_v35  ;;  %461 = vmatpush.msra.mxu2 %v745_v61  ;;  %v734_v61 = vld [vmem:[%s1294_s2 + $0xe0] sm:$0xff] }
  0xcf   :  { %573 = vmatpush.msra.mxu3 %v935_v36  ;;  %462 = vmatpush.msra.mxu2 %v744_v1 }
  0xd1   :  { %574 = vmatpush.msra.mxu3 %v942_v38  ;;  %463 = vmatpush.msra.mxu2 %v743_v6 }
  0xd3   :  { %575 = vmatpush.msra.mxu3 %v949_v39  ;;  %464 = vmatpush.msra.mxu2 %v742_v9 }
  0xd5   :  { %576 = vmatpush.msra.mxu3 %v956_v40  ;;  %465 = vmatpush.msra.mxu2 %v741_v12 }
  0xd7   :  { %577 = vmatpush.msra.mxu3 %v963_v41  ;;  %466 = vmatpush.msra.mxu2 %v740_v28 }
  0xd9   :  { %578 = vmatpush.msra.mxu3 %v968_v42 }
  0xdb   :  { %579 = vmatpush.msra.mxu3 %v975_v44 }
  0xdd   :  { %580 = vmatpush.msra.mxu3 %v982_v46 }
  0xdf   :  { %581 = vmatpush.msra.mxu3 %v989_v47 }
  0xe1   :  { %582 = vmatpush.msra.mxu3 %v996_v48 }
 0x14b   :  { %v198_v32 = vpop.f32.mrf.mxu2 }
 0x14c   :  { %v1041_v33 = vmul.f32 %v230_v31, %v198_v32  ;;  %v739_v32 = vld [vmem:[%s1294_s2 + $0x108] sm:$0xff] }
 0x14d   :  { %v221_v37 = vpop.f32.mrf.mxu3  ;;  %467 = vmatpush.msra.mxu2 %v739_v32 }
 0x14e   :  { %v233_v43 = vmul.f32 %v1041_v33, %v1041_v33  ;;  %v232_v45 = vmul.f32 %v230_v31, %v221_v37  ;;  %v717_v31 = vld [vmem:[%s1294_s2 + $0x98] sm:$0xff]  ;;  %v716_v37 = vld [vmem:[%s1294_s2 + $0x90] sm:$0xff] }
 0x14f   :  { %370 = vmatpush.msrb.mxu1 %v717_v31 }
 0x150   :  { %v234_v57 = vsub.f32 %v232_v45, %v233_v43  ;;  %v738_v43 = vld [vmem:[%s1294_s2 + $0x100] sm:$0xff]  ;;  %v313_v45 = vld [vmem:[%s1294_s2 + $0x10] sm:$0xff] }
 0x151   :  { %371 = vmatpush.msrb.mxu1 %v716_v37  ;;  %468 = vmatpush.msra.mxu2 %v738_v43 }
 0x152   :  { %v235_v62 = vmax.f32 %v234_v57, 0.0  ;;  %v311_v57 = vld [vmem:[%s1294_s2] sm:$0xff] }
 0x153   :  { %372 = vmatpush.msrb.mxu1 %v715_v49  ;;  %469 = vmatpush.msra.mxu2 %v737_v50 }
 0x154   :  { %v236_v2 = vadd.f32 1e-05, %v235_v62  ;;  %v502_v62 = vld [vmem:[%s1296_s6] sm:$0xff] }
 0x155   :  { %373 = vmatpush.msrb.mxu1 %v714_v55  ;;  %470 = vmatpush.msra.mxu2 %v736_v56 }
 0x156   :  { %763 = vrsqrt.f32 %v236_v2  ;;  %vm243_vm5 = vweird.f32 %v236_v2 }
 0x157   :  { %374 = vmatpush.msrb.mxu1 %v713_v58  ;;  %471 = vmatpush.msra.mxu2 %v735_v59 }
 0x159   :  { %375 = vmatpush.msrb.mxu1 %v712_v60  ;;  %472 = vmatpush.msra.mxu2 %v734_v61 }
 0x15b   :  { %594 = vmatpush.msra.mxu1 %v921_v34  ;;  %v770_v34 = vmov 0  }
 0x15c   :  { %v764_v14 = vpop.eup %763  ;;  %759 = vset.pattern.permute.xlu0 %v770_v34  ;;  %760 = vset.pattern.permute.xlu1 %v770_v34 }
 0x15d   :  { %v238_v15 = vmul.f32 %v764_v14, %v236_v2  ;;  %vm244_vm4 = vweird.f32 %v764_v14  ;;  %595 = vmatpush.msra.mxu1 %v928_v35  ;;  %510 = vperm.xlu0 %759, %v502_v62  }
 0x15e   :  { %vm245_vm6 = vmor %vm243_vm5, %vm244_vm4 }
 0x15f   :  { %v239_v16 = vmul.f32 %v764_v14, %v238_v15  ;;  %596 = vmatpush.msra.mxu1 %v935_v36 }
 0x161   :  { %v240_v17 = vmul.f32 0.5, %v239_v16  ;;  %597 = vmatpush.msra.mxu1 %v942_v38 }
 0x163   :  { %v241_v18 = vsub.f32 1.5, %v240_v17  ;;  %598 = vmatpush.msra.mxu1 %v949_v39 }
 0x165   :  { %v242_v20 = vmul.f32 %v764_v14, %v241_v18  ;;  %599 = vmatpush.msra.mxu1 %v956_v40 }
 0x167   :  { %v246_v21 = vsel %vm245_vm6, %v764_v14, %v242_v20  ;;  %600 = vmatpush.msra.mxu1 %v963_v41 }
 0x168   :  { %v247_v22 = vmul.f32 %v246_v21, %v144_v19 }
 0x169   :  { %601 = vmatpush.msra.mxu1 %v968_v42  ;;  %v504_v42 = vld [vmem:[%s1296_s6 + $0x10] sm:$0xff] }
 0x16a   :  { %710 = vmatmul.msk.f32.vlgmr.msrb.gmra.mxu2 %vm250_vm7, %v247_v22  ;;  %v248_v24 = vmul.f32 %v247_v22, %v1041_v33  ;;  %v314_v33 = vld [vmem:[%s1294_s2 + $0x18] sm:$0xff]  ;;  %520 = vperm.xlu1 %760, %v504_v42  }
 0x16b   :  { %409 = vmatpush.msrb.mxu0 %v314_v33  ;;  %602 = vmatpush.msra.mxu1 %v975_v44  ;;  %v503_v44 = vld [vmem:[%s1296_s6 + $0x8] sm:$0xff] }
 0x16c   :  { %v249_v25 = vsub.f32 %v145_v23, %v248_v24  ;;  %515 = vperm.xlu0 %759, %v503_v44  }
 0x16d   :  { %410 = vmatpush.msrb.mxu0 %v313_v45  ;;  %603 = vmatpush.msra.mxu1 %v982_v46 }
 0x16e   :  { %711 = vmatmul.msk.f32.vlgmr.msrb.gmra.mxu3 %vm250_vm7, %v249_v25 }
 0x16f   :  { %654 = vmatpush.msrb.mxu3 %v1033_v29  ;;  %411 = vmatpush.msrb.mxu0 %v312_v52 }
 0x170   :  { %604 = vmatpush.msra.mxu1 %v989_v47 }
 0x171   :  { %412 = vmatpush.msrb.mxu0 %v311_v57 }
 0x172   :  { %605 = vmatpush.msra.mxu1 %v996_v48  ;;  %525 = vperm.xlu1 %760, %v505_v5  }
 0x1cf   :  { %v511_v23 = vpop.permute.xlu0 %510 }
 0x1dc   :  { %v521_v37 = vpop.permute.xlu1 %520 }
 0x1de   :  { %v516_v31 = vpop.permute.xlu0 %515 }
 0x1ed   :  { %v271_v35 = vpop.f32.mrf.mxu2 }
 0x1ee   :  { %v297_v36 = vperm.slane %v271_v35, 0 }
 0x1f0   :  { %v298_v39 = vmul.f32 %v297_v36, %v1004_v53  ;;  %v299_v40 = vmul.f32 %v297_v36, %v1002_v51  ;;  %v300_v46 = vmul.f32 %v297_v36, %v1006_v54  ;;  %v301_v8 = vmul.f32 %v297_v36, %v1023_v3 }
 0x1f1   :  { %v294_v38 = vpop.f32.mrf.mxu3 }
 0x1f2   :  { %v302_v41 = vperm.slane %v294_v38, 0 }
 0x1f4   :  { %v304_v63 = vadd.f32 %v302_v41, %v299_v40  ;;  %v303_v47 = vadd.f32 %v302_v41, %v298_v39  ;;  %v305_v48 = vadd.f32 %v302_v41, %v300_v46  ;;  %v306_v9 = vadd.f32 %v302_v41, %v301_v8  ;;  %v526_v40 = vpop.permute.xlu1 %525 }
 0x1f6   :  { %v308_v0 = vmax.f32 %v304_v63, 0.0  ;;  %v307_v53 = vmax.f32 %v303_v47, 0.0  ;;  %v309_v54 = vmax.f32 %v305_v48, 0.0  ;;  %v310_v12 = vmax.f32 %v306_v9, 0.0 }
 0x1f8   :  { %730 = vmatmul.msk.f32.vlgmr.msrb.gmra.mxu0 %vm146_vm1, %v307_v53  ;;  %v345_v51 = vrot.slane %v307_v53, 1  ;;  %v346_v1 = vrot.slane %v308_v0, 1  ;;  %v442_v2 = vrot.slane %v307_v53, 2  ;;  %v443_v4 = vrot.slane %v308_v0, 2 }
 0x1f9   :  { %v348_v10 = vrot.slane %v309_v54, 1  ;;  %v445_v11 = vrot.slane %v309_v54, 2  ;;  %v350_v15 = vrot.slane %v310_v12, 1  ;;  %v447_v16 = vrot.slane %v310_v12, 2 }
 0x1fa   :  { %v347_v6 = vsel %vm344_vm8, %v345_v51, %v346_v1  ;;  %v444_v7 = vsel %vm441_vm9, %v442_v2, %v443_v4 }
 0x1fb   :  { %726 = vmatmul.msk.f32.vlgmr.msrb.gmra.mxu1 %vm146_vm1, %v347_v6  ;;  %748 = vmatmul.msk.f32.vlgmr.msra.gmra.mxu2 %vm146_vm1, %v444_v7  ;;  %v349_v13 = vsel %vm344_vm8, %v346_v1, %v348_v10  ;;  %v446_v14 = vsel %vm441_vm9, %v443_v4, %v445_v11  ;;  %v351_v3 = vsel %vm344_vm8, %v348_v10, %v350_v15 }
 0x1fc   :  { %v448_v17 = vsel %vm441_vm9, %v445_v11, %v447_v16 }
 0x200   :  { %731 = vmatmul.msk.f32.gmra.mxu0 %vm146_vm1, %v308_v0 }
 0x203   :  { %727 = vmatmul.msk.f32.gmra.mxu1 %vm146_vm1, %v349_v13  ;;  %749 = vmatmul.msk.f32.gmra.mxu2 %vm146_vm1, %v446_v14  ;;  %v771_v14 = vmov 288.0  }
 0x204   :  { %765 = vrcp.f32 %v771_v14 }
 0x208   :  { %732 = vmatmul.msk.f32.gmra.mxu0 %vm146_vm1, %v309_v54 }
 0x20b   :  { %728 = vmatmul.msk.f32.gmra.mxu1 %vm146_vm1, %v351_v3  ;;  %750 = vmatmul.msk.f32.gmra.mxu2 %vm146_vm1, %v448_v17 }
 0x210   :  { %733 = vmatmul.msk.f32.gmra.mxu0 %vm146_vm1, %v310_v12 }
 0x213   :  { %729 = vmatmul.msk.f32.gmra.mxu1 %vm146_vm1, %v350_v15  ;;  %751 = vmatmul.msk.f32.gmra.mxu2 %vm146_vm1, %v447_v16  ;;  %v766_v15 = vpop.eup %765 }
 0x214   :  { %v611_v16 = vmul.f32 288.0, %v766_v15  ;;  %vm615_vm12 = vweird.f32 %v766_v15 }
 0x216   :  { %v612_v3 = vsub.f32 1.0, %v611_v16 }
 0x218   :  { %v613_v17 = vmul.f32 %v766_v15, %v612_v3 }
 0x275   :  { %v414_v18 = vpop.f32.mrf.mxu0 }
 0x278   :  { %v377_v19 = vpop.f32.mrf.mxu1 }
 0x279   :  { %v415_v28 = vadd.f32 %v414_v18, %v377_v19  ;;  %v614_v18 = vadd.f32 %v766_v15, %v613_v17 }
 0x27d   :  { %v417_v21 = vpop.f32.mrf.mxu0 }
 0x27e   :  { %v474_v20 = vpop.f32.mrf.mxu2 }
 0x27f   :  { %v1237_v32 = vadd.f32 %v474_v20, %v415_v28  ;;  %v616_v20 = vsel %vm615_vm12, %v766_v15, %v614_v18 }
 0x280   :  { %v380_v22 = vpop.f32.mrf.mxu1 }
 0x281   :  { %v418_v26 = vadd.f32 %v417_v21, %v380_v22  ;;  %v528_v50 = vmul.f32 %v511_v23, %v1237_v32 }
 0x283   :  { %v547_v58 = vmul.f32 %v528_v50, %v1237_v32  ;;  %v533_v34 = vsel %vm532_vm10, %v528_v50, 0.0 }
 0x285   :  { %v420_v27 = vpop.f32.mrf.mxu0  ;;  %v551_v41 = vsel %vm532_vm10, %v547_v58, 0.0 }
 0x286   :  { %v477_v24 = vpop.f32.mrf.mxu2 }
 0x287   :  { %v1235_v30 = vadd.f32 %v477_v24, %v418_v26 }
 0x288   :  { %v383_v25 = vpop.f32.mrf.mxu1 }
 0x289   :  { %v421_v33 = vadd.f32 %v420_v27, %v383_v25  ;;  %v529_v45 = vmul.f32 %v516_v31, %v1235_v30 }
 0x28b   :  { %v548_v56 = vmul.f32 %v529_v45, %v1235_v30  ;;  %v534_v59 = vsel %vm532_vm10, %v529_v45, 0.0 }
 0x28c   :  { %v535_v39 = vadd.f32 %v534_v59, %v533_v34 }
 0x28d   :  { %v423_v57 = vpop.f32.mrf.mxu0  ;;  %v552_v35 = vsel %vm532_vm10, %v548_v56, 0.0  ;;  %v507_v56 = vld [vmem:[%s1295_s3 + $0x3] sm:$0x1] }
 0x28e   :  { %v480_v43 = vpop.f32.mrf.mxu2  ;;  %v553_v46 = vadd.f32 %v552_v35, %v551_v41 }
 0x28f   :  { %v1240_v49 = vadd.f32 %v480_v43, %v421_v33  ;;  %v506_v43 = vld [vmem:[%s1295_s3 + $0x2] sm:$0x1] }
 0x290   :  { %v386_v55 = vpop.f32.mrf.mxu1 }
 0x291   :  { %v530_v52 = vmul.f32 %v521_v37, %v1240_v49  ;;  %v424_v61 = vadd.f32 %v423_v57, %v386_v55 }
 0x293   :  { %v549_v60 = vmul.f32 %v530_v52, %v1240_v49  ;;  %v536_v36 = vsel %vm532_vm10, %v530_v52, 0.0 }
 0x294   :  { %v537_v63 = vadd.f32 %v536_v36, %v535_v39 }
 0x295   :  { %v554_v42 = vsel %vm532_vm10, %v549_v60, 0.0 }
 0x296   :  { %v483_v62 = vpop.f32.mrf.mxu2  ;;  %v555_v0 = vadd.f32 %v554_v42, %v553_v46 }
 0x297   :  { %v1251_v38 = vadd.f32 %v483_v62, %v424_v61 }
 0x299   :  { %v531_v44 = vmul.f32 %v526_v40, %v1251_v38 }
 0x29b   :  { %v539_v47 = vsel %vm538_vm11, %v531_v44, 0.0  ;;  %v550_v48 = vmul.f32 %v531_v44, %v1251_v38 }
 0x29c   :  { %v540_v53 = vadd.f32 %v539_v47, %v537_v63 }
 0x29d   :  { %v556_v51 = vsel %vm538_vm11, %v550_v48, 0.0 }
 0x29e   :  { %v541_v1 = vrot.slane %v540_v53, 4  ;;  %v557_v2 = vadd.f32 %v556_v51, %v555_v0 }
 0x2a0   :  { %v542_v4 = vadd.f32 %v541_v1, %v540_v53  ;;  %v558_v5 = vrot.slane %v557_v2, 4 }
 0x2a2   :  { %v543_v54 = vrot.slane %v542_v4, 2  ;;  %v559_v6 = vadd.f32 %v558_v5, %v557_v2 }
 0x2a4   :  { %v544_v7 = vadd.f32 %v543_v54, %v542_v4  ;;  %v560_v8 = vrot.slane %v559_v6, 2 }
 0x2a6   :  { %v561_v9 = vadd.f32 %v560_v8, %v559_v6  ;;  %v545_v10 = vrot.slane %v544_v7, 1 }
 0x2a8   :  { %v546_v11 = vadd.f32 %v545_v10, %v544_v7  ;;  %v562_v12 = vrot.slane %v561_v9, 1 }
 0x2aa   :  { %752 = vmatmul.msk.f32.vlgmr.msra.gmra.mxu3 %vm532_vm10, %v546_v11  ;;  %v563_v13 = vadd.f32 %v562_v12, %v561_v9 }
 0x2ab   :  { %677 = vmatpush.msra.mxu3 %v1033_v29 }
 0x2ac   :  { %753 = vmatmul.msk.f32.vlgmr.msra.gmra.mxu1 %vm532_vm10, %v563_v13 }
 0x329   :  { %v607_v19 = vpop.f32.mrf.mxu1 }
 0x32a   :  { %v618_v23 = vmul.f32 %v616_v20, %v607_v19 }
 0x32d   :  { %v584_v21 = vpop.f32.mrf.mxu3 }
 0x32e   :  { %v617_v22 = vmul.f32 %v616_v20, %v584_v21 }
 0x330   :  { %v619_v24 = vmul.f32 %v617_v22, %v617_v22 }
 0x332   :  { %v620_v25 = vsub.f32 %v618_v23, %v619_v24 }
 0x334   :  { %v621_v26 = vmax.f32 %v620_v25, 0.0 }
 0x336   :  { %v622_v27 = vadd.f32 1e-05, %v621_v26 }
 0x338   :  { %767 = vrsqrt.f32 %v622_v27  ;;  %vm629_vm14 = vweird.f32 %v622_v27 }
 0x33e   :  { %v768_v29 = vpop.eup %767 }
 0x33f   :  { %v624_v28 = vmul.f32 %v768_v29, %v622_v27  ;;  %vm630_vm13 = vweird.f32 %v768_v29 }
 0x340   :  { %vm631_vm15 = vmor %vm629_vm14, %vm630_vm13 }
 0x341   :  { %v625_v31 = vmul.f32 %v768_v29, %v624_v28 }
 0x343   :  { %v626_v33 = vmul.f32 0.5, %v625_v31 }
 0x345   :  { %v627_v37 = vsub.f32 1.5, %v626_v33 }
 0x347   :  { %v628_v45 = vmul.f32 %v768_v29, %v627_v37 }
 0x349   :  { %v632_v50 = vsel %vm631_vm15, %v768_v29, %v628_v45 }
 0x34a   :  { %v633_v52 = vmul.f32 %v632_v50, %v506_v43 }
 0x34c   :  { %754 = vmatmul.msk.f32.vlgmr.msrb.gmra.mxu3 %vm250_vm7, %v633_v52  ;;  %v634_v55 = vmul.f32 %v633_v52, %v617_v22 }
 0x34e   :  { %v635_v57 = vsub.f32 %v507_v56, %v634_v55 }
 0x354   :  { %755 = vmatmul.msk.f32.vlgmr.msra.gmra.mxu3 %vm250_vm7, %v635_v57 }
 0x3cf   :  { %v656_v58 = vpop.f32.mrf.mxu3 }
 0x3d0   :  { %v682_v59 = vperm.slane %v656_v58, 0 }
 0x3d2   :  { %v683_v60 = vmul.f32 %v682_v59, %v1237_v32  ;;  %v684_v62 = vmul.f32 %v682_v59, %v1235_v30  ;;  %v685_v34 = vmul.f32 %v682_v59, %v1240_v49  ;;  %v686_v35 = vmul.f32 %v682_v59, %v1251_v38 }
 0x3d7   :  { %v679_v61 = vpop.f32.mrf.mxu3 }
 0x3d8   :  { %v687_v36 = vperm.slane %v679_v61, 0 }
 0x3da   :  { %v688_v39 = vadd.f32 %v687_v36, %v683_v60  ;;  %v689_v40 = vadd.f32 %v687_v36, %v684_v62  ;;  %v690_v41 = vadd.f32 %v687_v36, %v685_v34  ;;  %v691_v42 = vadd.f32 %v687_v36, %v686_v35 }
 0x3dc   :  { %v692_v44 = vmax.f32 %v688_v39, 0.0  ;;  %v693_v46 = vmax.f32 %v689_v40, 0.0  ;;  %v694_v63 = vmax.f32 %v690_v41, 0.0  ;;  %v695_v47 = vmax.f32 %v691_v42, 0.0 }
 0x3de   :  { %696 = vst.msk [vmem:[%s1297_s7] sm:$0xff] %vm532_vm10, %v692_v44 }
 0x3df   :  { %697 = vst.msk [vmem:[%s1297_s7 + $0x8] sm:$0xff] %vm532_vm10, %v693_v46 }
 0x3e0   :  { %698 = vst.msk [vmem:[%s1297_s7 + $0x10] sm:$0xff] %vm532_vm10, %v694_v63 }
 0x3e1   :  { %699 = vst.msk [vmem:[%s1297_s7 + $0x18] sm:$0x3] %vm538_vm11, %v695_v47 }

</bundles_post_ra>
